<compile_context>
chip_gen: v7x
topology: tpu7x:2x2x1
jax: 0.10.0
libtpu: 0.0.40
codegen_flags: <defaults>
</compile_context>

<pallas_src>
import functools
import math

import jax
import jax.numpy as jnp
from jax import lax
from jax.experimental import pallas as pl
from jax.experimental.pallas import tpu as pltpu


def _round_up(x: int, m: int) -> int:
    return ((x + m - 1) // m) * m


def _pick_tk(nf_pad: int, tk_max: int) -> int:
    """Largest multiple of 128 that divides nf_pad, capped at tk_max."""
    if nf_pad <= tk_max:
        return nf_pad
    t = tk_max - (tk_max % 128)
    while t >= 128:
        if nf_pad % t == 0:
            return t
        t -= 128
    return 128  # nf_pad is always a multiple of 128, so this divides.


def _flatten_head_kernel_accout(x_ref, w_ref, b_ref, o_ref):
    """f32-output variant: accumulate directly into the resident output tile."""
    # x_ref: (tm, tk)  w_ref: (tk, tn)  b_ref: (1, tn) f32  o_ref: (tm, tn) f32
    k = pl.program_id(2)

    @pl.when(k == 0)
    def _():
        # Bias-init exactly once; subsequent K steps accumulate on top.
        o_ref[...] = jnp.broadcast_to(b_ref[...], o_ref.shape)

    o_ref[...] += jnp.dot(
        x_ref[...], w_ref[...], preferred_element_type=jnp.float32
    )


def _flatten_head_kernel_scratch(x_ref, w_ref, b_ref, o_ref, acc_ref):
    """Non-f32-output variant: f32 VMEM accumulator, cast in the epilogue."""
    k = pl.program_id(2)

    @pl.when(k == 0)
    def _():
        acc_ref[...] = jnp.zeros_like(acc_ref)

    acc_ref[...] += jnp.dot(
        x_ref[...], w_ref[...], preferred_element_type=jnp.float32
    )

    @pl.when(k == pl.num_programs(2) - 1)
    def _():
        o_ref[...] = (acc_ref[...] + b_ref[...]).astype(o_ref.dtype)

    # TODO(synk): dropout with p>0 in training mode would need pltpu.prng_* masking;
    # head_dropout=0 / eval mode is an identity, so it is omitted here.


def prepare_flatten_head_params(weight_t, bias, *, mxu_dtype=None):
    """Run ONCE at init: pad weight to (nf_pad, tw_pad) = 128-aligned and cast.

    weight_t : [nf, target_window]  (Linear weight already transposed)
    bias     : [target_window]
    Returns (weight_prepared [nf_pad, tw_pad], bias_prepared [tw_pad] f32).
    """
    nf, tw = weight_t.shape
    nf_pad = _round_up(nf, 128)
    tw_pad = _round_up(tw, 128)
    w = weight_t
    if (nf_pad, tw_pad) != (nf, tw):
        w = jnp.pad(w, ((0, nf_pad - nf), (0, tw_pad - tw)))
    if mxu_dtype is not None:
        w = w.astype(mxu_dtype)
    b = bias.astype(jnp.float32)
    if tw_pad != tw:
        b = jnp.pad(b, (0, tw_pad - tw))
    return w, b


def flatten_head_forward(
    x,
    weight_prepared,
    bias_prepared,
    *,
    target_window: int,
    mxu_dtype=None,
    tm: int = 512,
    tn_cap: int = 1024,
    tk_max: int = 1024,
    min_pallas_elems: int = 1 << 15,
):
    """FlattenHead forward.

    x               : [B, n_vars, d_model, patch_num]
    weight_prepared : [nf_pad, tw_pad]  (from prepare_flatten_head_params)
    bias_prepared   : [tw_pad] f32      (from prepare_flatten_head_params)
    """
    B, n_vars, d_model, patch_num = x.shape
    nf = d_model * patch_num
    nf_pad, tw_pad = weight_prepared.shape
    tw = target_window
    assert nf_pad == _round_up(nf, 128), (
        f"weight must be prepared for nf={nf}; got first dim {nf_pad}"
    )
    assert tw_pad >= tw and tw_pad % 128 == 0
    M = B * n_vars

    out_dtype = x.dtype
    x_flat = x.reshape(M, nf)  # Flatten(start_dim=-2) fused with batch dims.

    # Tiny problems: a Pallas launch is pure overhead; let XLA handle/fuse it.
    if M * nf * tw < min_pallas_elems:
        xk = x_flat if nf_pad == nf else jnp.pad(x_flat, ((0, 0), (0, nf_pad - nf)))
        if mxu_dtype is not None:
            xk = xk.astype(mxu_dtype)
        out = (
            jnp.dot(xk, weight_prepared, preferred_element_type=jnp.float32)
            + bias_prepared
        )
        return out[:, :tw].astype(out_dtype).reshape(B, n_vars, tw)

    # Optional bf16 MXU path: halves HBM bytes for x; accumulation stays f32.
    if mxu_dtype is not None and x_flat.dtype != mxu_dtype:
        x_flat = x_flat.astype(mxu_dtype)

    # ---- tile-size selection --------------------------------------------------
    m_align = 16 if x_flat.dtype == jnp.bfloat16 else 8  # packed sublane rows
    tm_e = min(tm, _round_up(M, m_align))
    M_pad = _round_up(M, tm_e)

    tk_e = _pick_tk(nf_pad, tk_max)  # divides nf_pad exactly -> no K-tail waste

    if tw_pad <= tn_cap:
        tn_e = tw_pad  # j axis collapses to 1 block: x streamed from HBM once
    else:
        tn_e = 512 if tw_pad % 512 == 0 else (256 if tw_pad % 256 == 0 else 128)

    # Megacore (v7x): make sure the parallel axes have >= 2 blocks total.
    if (M_pad // tm_e) * (tw_pad // tn_e) == 1:
        if tw_pad % 256 == 0:
            tn_e = tw_pad // 2
        elif M_pad % (2 * m_align) == 0:
            tm_e = M_pad // 2

    # Pad x only where strictly needed (M to tile multiple, K only if nf!=nf_pad).
    if (M_pad, nf_pad) != (M, nf):
        x_flat = jnp.pad(x_flat, ((0, M_pad - M), (0, nf_pad - nf)))

    grid = (M_pad // tm_e, tw_pad // tn_e, nf_pad // tk_e)
    b2d = bias_prepared.reshape(1, tw_pad)

    acc_in_out = out_dtype == jnp.float32
    if acc_in_out:
        kernel = _flatten_head_kernel_accout
        scratch = []
        out_store_dtype = jnp.float32
        o_item = 4
    else:
        kernel = _flatten_head_kernel_scratch
        scratch = [pltpu.VMEM((tm_e, tn_e), jnp.float32)]
        out_store_dtype = out_dtype
        o_item = out_dtype.itemsize

    # VMEM footprint (double-buffered inputs/outputs + accumulator) -> limit.
    footprint = (
        2 * tm_e * tk_e * x_flat.dtype.itemsize
        + 2 * tk_e * tn_e * weight_prepared.dtype.itemsize
        + 2 * tm_e * tn_e * o_item
        + 2 * tn_e * 4
        + (0 if acc_in_out else tm_e * tn_e * 4)
    )
    vmem_limit = min(max(footprint + (4 << 20), 32 << 20), 48 << 20)

    out_pad = pl.pallas_call(
        kernel,
        out_shape=jax.ShapeDtypeStruct((M_pad, tw_pad), out_store_dtype),
        grid_spec=pltpu.PrefetchScalarGridSpec(
            num_scalar_prefetch=0,
            grid=grid,
            in_specs=[
                pl.BlockSpec((tm_e, tk_e), lambda i, j, k: (i, k)),   # x tile
                pl.BlockSpec((tk_e, tn_e), lambda i, j, k: (k, j)),   # W tile
                pl.BlockSpec((1, tn_e), lambda i, j, k: (0, j)),      # bias tile
            ],
            out_specs=pl.BlockSpec((tm_e, tn_e), lambda i, j, k: (i, j)),
            scratch_shapes=scratch,
        ),
        compiler_params=pltpu.CompilerParams(
            dimension_semantics=("parallel", "parallel", "arbitrary"),
            vmem_limit_bytes=vmem_limit,
        ),
    )(x_flat, weight_prepared, b2d)

    return out_pad[:M, :tw].astype(out_dtype).reshape(B, n_vars, tw)


def init_flatten_head_params(key, nf, target_window, dtype=jnp.float32):
    """nn.Linear-style init; weight returned PRE-TRANSPOSED as [nf, target_window]."""
    k_w, k_b = jax.random.split(key)
    bound = 1.0 / math.sqrt(nf)
    weight_t = jax.random.uniform(k_w, (nf, target_window), dtype, -bound, bound)
    bias = jax.random.uniform(k_b, (target_window,), dtype, -bound, bound)
    return weight_t, bias


if __name__ == "__main__":
    # Small shapes consistent with the module's forward, large enough to take the
    # Pallas path and exercise tw padding (96 -> 128) and a 2-step K reduction.
    B, n_vars, d_model, patch_num = 2, 4, 32, 8
    nf = d_model * patch_num            # 256
    target_window = 96                  # padded once at init to 128 (lane-dense)

    key = jax.random.PRNGKey(0)
    k_x, k_p = jax.random.split(key)
    x = jax.random.normal(k_x, (B, n_vars, d_model, patch_num), dtype=jnp.float32)
    weight_t, bias = init_flatten_head_params(k_p, nf, target_window)

    # Plain-JAX reference (same semantics as the PyTorch module in eval mode).
    ref = (
        jnp.dot(x.reshape(B, n_vars, nf), weight_t, precision=lax.Precision.HIGHEST)
        + bias
    )

    # --- 1) Exact f32 path; tk_max=128 -> nf/tk = 2 K-steps (init/accumulate). ---
    w_f32, b_f32 = prepare_flatten_head_params(weight_t, bias)
    fwd_f32 = jax.jit(
        functools.partial(flatten_head_forward, target_window=target_window, tk_max=128)
    )
    out_f32 = jax.block_until_ready(fwd_f32(x, w_f32, b_f32))
    assert out_f32.shape == (B, n_vars, target_window)
    assert jnp.allclose(out_f32, ref, atol=1e-3, rtol=1e-3), (
        f"f32 path max abs err {jnp.max(jnp.abs(out_f32 - ref))}"
    )

    # --- 2) bf16 MXU path (weight stored bf16 at init; f32 accumulation/output). ---
    w_bf16, b_bf16 = prepare_flatten_head_params(weight_t, bias, mxu_dtype=jnp.bfloat16)
    fwd_bf16 = jax.jit(
        functools.partial(
            flatten_head_forward, target_window=target_window, mxu_dtype=jnp.bfloat16
        )
    )
    out_bf16 = jax.block_until_ready(fwd_bf16(x, w_bf16, b_bf16))
    assert out_bf16.shape == (B, n_vars, target_window)
    assert jnp.allclose(out_bf16, ref, atol=5e-2, rtol=5e-2), (
        f"bf16 path max abs err {jnp.max(jnp.abs(out_bf16 - ref))}"
    )

    # --- 3) bf16 activations end-to-end (exercises the scratch-accumulator kernel). ---
    fwd_bf16_io = jax.jit(
        functools.partial(flatten_head_forward, target_window=target_window, tk_max=128)
    )
    out_b = jax.block_until_ready(fwd_bf16_io(x.astype(jnp.bfloat16), w_bf16, b_bf16))
    assert out_b.dtype == jnp.bfloat16
    assert jnp.allclose(out_b.astype(jnp.float32), ref, atol=7e-2, rtol=7e-2), (
        f"bf16 io path max abs err {jnp.max(jnp.abs(out_b.astype(jnp.float32) - ref))}"
    )

    print("KERNEL_OK")
</pallas_src>

<mosaic_0001>
module attributes {stable_mosaic.version = 11 : i64} {
  func.func @_flatten_head_kernel_accout(%arg0: i32, %arg1: i32, %arg2: i32, %arg3: memref<8x128xf32, #tpu.memory_space<vmem>>, %arg4: memref<128x128xf32, #tpu.memory_space<vmem>>, %arg5: memref<1x128xf32, #tpu.memory_space<vmem>>, %arg6: memref<8x128xf32, #tpu.memory_space<vmem>>) attributes {dimension_semantics = [#tpu.dimension_semantics<parallel>, #tpu.dimension_semantics<parallel>, #tpu.dimension_semantics<arbitrary>], iteration_bounds = array<i64: 1, 1, 2>, scalar_prefetch = 0 : i64, scratch_operands = 0 : i64, tpu.core_type = #tpu.core_type<tc>, window_params = [{transform_indices = @transform_0, window_bounds = array<i64: 8, 128>}, {transform_indices = @transform_1, window_bounds = array<i64: 128, 128>}, {transform_indices = @transform_2, window_bounds = array<i64: 1, 128>}, {transform_indices = @transform_3, window_bounds = array<i64: 8, 128>}]} {
    %c0_i32 = arith.constant 0 : i32
    %0 = arith.cmpi eq, %arg2, %c0_i32 : i32
    %1 = arith.extui %0 : i1 to i32
    %c0_i32_0 = arith.constant 0 : i32
    %2 = arith.cmpi ne, %1, %c0_i32_0 : i32
    scf.if %2 {
      %c0_8 = arith.constant 0 : index
      %c0_9 = arith.constant 0 : index
      %9 = vector.load %arg5[%c0_8, %c0_9] : memref<1x128xf32, #tpu.memory_space<vmem>>, vector<1x128xf32>
      %10 = vector.shape_cast %9 : vector<1x128xf32> to vector<1x128xf32>
      %11 = vector.broadcast %10 : vector<1x128xf32> to vector<8x128xf32>
      %c0_10 = arith.constant 0 : index
      %c0_11 = arith.constant 0 : index
      %12 = vector.load %arg6[%c0_10, %c0_11] : memref<8x128xf32, #tpu.memory_space<vmem>>, vector<8x128xf32>
      tpu.vector_store %arg6[%c0_10, %c0_11], %11 {strides = array<i32>} : memref<8x128xf32, #tpu.memory_space<vmem>>, vector<8x128xf32>,
    } else {
    }
    %c0 = arith.constant 0 : index
    %c0_1 = arith.constant 0 : index
    %3 = vector.load %arg6[%c0, %c0_1] : memref<8x128xf32, #tpu.memory_space<vmem>>, vector<8x128xf32>
    %c0_2 = arith.constant 0 : index
    %c0_3 = arith.constant 0 : index
    %4 = vector.load %arg3[%c0_2, %c0_3] : memref<8x128xf32, #tpu.memory_space<vmem>>, vector<8x128xf32>
    %c0_4 = arith.constant 0 : index
    %c0_5 = arith.constant 0 : index
    %5 = vector.load %arg4[%c0_4, %c0_5] : memref<128x128xf32, #tpu.memory_space<vmem>>, vector<128x128xf32>
    %cst = arith.constant dense<0.000000e+00> : vector<8x128xf32>
    %6 = tpu.matmul %4, %5, %cst {dimension_numbers = #tpu.dot_dimension_numbers<[1], [0], [0], [1], [0, 0, 1, 1], [], []>} : vector<8x128xf32>, vector<128x128xf32>, vector<8x128xf32> -> vector<8x128xf32>
    %7 = arith.addf %3, %6 : vector<8x128xf32>
    %c0_6 = arith.constant 0 : index
    %c0_7 = arith.constant 0 : index
    %8 = vector.load %arg6[%c0_6, %c0_7] : memref<8x128xf32, #tpu.memory_space<vmem>>, vector<8x128xf32>
    tpu.vector_store %arg6[%c0_6, %c0_7], %7 {strides = array<i32>} : memref<8x128xf32, #tpu.memory_space<vmem>>, vector<8x128xf32>,
    return
  }
  func.func @transform_0(%arg0: i32, %arg1: i32, %arg2: i32) -> (i32, i32) {
    %c0_i32 = arith.constant 0 : i32
    return %arg0, %arg2 : i32, i32
  }
  func.func @transform_1(%arg0: i32, %arg1: i32, %arg2: i32) -> (i32, i32) {
    %c0_i32 = arith.constant 0 : i32
    return %arg2, %arg1 : i32, i32
  }
  func.func @transform_2(%arg0: i32, %arg1: i32, %arg2: i32) -> (i32, i32) {
    %c0_i32 = arith.constant 0 : i32
    %c0_i32_0 = arith.constant 0 : i32
    return %c0_i32, %arg1 : i32, i32
  }
  func.func @transform_3(%arg0: i32, %arg1: i32, %arg2: i32) -> (i32, i32) {
    %c0_i32 = arith.constant 0 : i32
    return %arg0, %arg1 : i32, i32
  }
}

</mosaic_0001>

<bundles_post_ra>
// kernel: flatten_head_forward.1
= control target key start
LH: loop header
LB: loop body
LE: loop exit
PB: predicated region body
PF: predicated region fallthrough
CT: control target
= control target key end

     0   :  { %8 = vsyncpa [#allocation3], 0  ;;  %s642_s12 = smov 0   ;;  %s644_s13 = smov 0   ;;  %s728_s0 = inlined_call_operand.vmem [shape: f32[8,256], index: 0, kind: input, shape index: {}]   ;;  %s729_s1 = inlined_call_operand.vmem [shape: f32[256,128], index: 1, kind: input, shape index: {}]   ;;  %s730_s2 = inlined_call_operand.vmem [shape: f32[1,128], index: 2, kind: input, shape index: {}]   ;;  %s731_s3 = inlined_call_operand.hbm [shape: f32[8,128], index: 3, kind: output, shape index: {}]  }
   0x1   :  { %s646_s14 = smov 0  }
   0x2 LB: > { %s440_s15 = sadd.s32 4294967295, %s616_s14   ;;  %s26_s16 = sadd.s32 1, %s612_s13  ;;  %s616_s14 = sphi %s646_s14, %s14_s14   ;;  %s612_s13 = sphi %s644_s13, %s734_s13   ;;  %s608_s12 = sphi %s642_s12, %s733_s12  }
   0x3   : > { %p27_p0 = scmp.ge.s32.totalorder %s26_s16, 2  ;;  %p444_p1 = scmp.ge.s32.totalorder %s616_s14, 1 }
   0x4   : > { %p188_p2 = scmp.lt.s32.totalorder %s616_s14, 3 }
   0x5   : > { %s736_s16 = smov (%p27_p0, %s26_s16), 0 }
   0x6   : > { %p189_p3 = pnand %p444_p1, %p188_p2 }
   0x7   : > { %p223_p4 = scmp.lt.s32.totalorder (!%p189_p3), %s608_s12, 1  ;;  %s446_s17 = sshll.u32 (!%p189_p3), %s608_s12, 4 }
   0x8   : > { %192 = sbr.rel (%p189_p3) target bundleno = 286 (0x11e), region = 32  ;;  %p230_p5 = scmp.lt.s32.totalorder (!%p189_p3), %s446_s17, 31 }
   0x9   : > { %p448_p6 = scmp.ne.s32.totalorder (!%p189_p3), %s608_s12, 0 }
   0xf   : > { %s224_s18 = scalar_select %p223_p4, %s608_s12, 1 }
  0x10   : > { %s738_s17 = smov (!%p230_p5, %s446_s17), 31  ;;  %244 = sbr.rel (%p448_p6) target bundleno = 23 (0x17), region = 36 }
  0x11   : > { %s445_s19 = sshll.u32 %s224_s18, 3  ;;  %s447_s23 = sshll.u32 %s738_s17, 3  ;;  %v449_v0 = vld [vmem:[%s730_s2] ss:$0 sm:$0xff] (!%p448_p6) }
  0x12   : > { %s664_s22 = scalar_lea.vmem %s728_s0, %s445_s19  ;;  %s669_s26 = scalar_lea.vmem %s729_s1, %s447_s23  ;;  %252 = vst [vmem:[#allocation2] sm:$0xff] (!%p448_p6), %v449_v0 }
  0x17 PF: > { %v255_v1 = vld [vmem:[%s669_s26] sm:$0xff]  ;;  %v256_v2 = vld [vmem:[%s669_s26 + $0x8] sm:$0xff]  ;;  %v257_v3 = vld [vmem:[%s669_s26 + $0x10] sm:$0xff]  ;;  %v618_v4 = vmov 0.0|0.0   ;;  %vm619_vm0 = vmmov 0   ;;  %v620_v7 = vmov 0.0  }
  0x18   : > { %506 = vmatprep.subr.bf16.mxu0 %v618_v4  ;;  %v507_v5 = vpack.c.bf16 %v256_v2, %v255_v1  ;;  %v258_v6 = vld [vmem:[%s669_s26 + $0x18] sm:$0xff]  ;;  %503 = vmatprep.mubr.msk.f32.mxu0 %vm619_vm0, %v620_v7  ;;  %v259_v9 = vld [vmem:[%s669_s26 + $0x20] sm:$0xff]  ;;  %v260_v10 = vld [vmem:[%s669_s26 + $0x28] sm:$0xff]  ;;  %s621_s29 = smov [#allocation2]   ;;  %p693_p7 = scmp.eq.s32.totalorder %s440_s15, 1 }
  0x19   : > { %v510_v8 = vpack.c.bf16 %v258_v6, %v257_v3  ;;  %v513_v11 = vpack.c.bf16 %v260_v10, %v259_v9  ;;  %v261_v12 = vld [vmem:[%s669_s26 + $0x30] sm:$0xff]  ;;  %v262_v13 = vld [vmem:[%s669_s26 + $0x38] sm:$0xff]  ;;  %v263_v15 = vld [vmem:[%s669_s26 + $0x40] sm:$0xff]  ;;  %s353_s30 = sshll.u32 %s621_s29, 4  ;;  %s354_s30 = int_to_ptr.vmem [resolvable:$true] %s353_s30 }
  0x1a   : > { %508 = vmatpush3.bf16.msra.mxu0 %v507_v5  ;;  %v516_v14 = vpack.c.bf16 %v262_v13, %v261_v12  ;;  %v264_v16 = vld [vmem:[%s669_s26 + $0x48] sm:$0xff]  ;;  %v265_v18 = vld [vmem:[%s669_s26 + $0x50] sm:$0xff]  ;;  %v266_v19 = vld [vmem:[%s669_s26 + $0x58] sm:$0xff]  ;;  %s564_s5 = scalar_lea.vmem %s354_s30, 128  ;;  %p571_p11 = scmp.lt.s32.totalorder %s354_s30, %s354_s30 }
  0x1b   : > { %509 = vmatprep.subr.bf16.mxu0 %v618_v4  ;;  %v519_v17 = vpack.c.bf16 %v264_v16, %v263_v15  ;;  %v522_v20 = vpack.c.bf16 %v266_v19, %v265_v18  ;;  %v267_v21 = vld [vmem:[%s669_s26 + $0x60] sm:$0xff]  ;;  %v268_v22 = vld [vmem:[%s669_s26 + $0x68] sm:$0xff]  ;;  %v269_v24 = vld [vmem:[%s669_s26 + $0x70] sm:$0xff]  ;;  %p565_p8 = scmp.ne.s32.totalorder %s354_s30, %s564_s5  ;;  %p572_p12 = scmp.lt.s32.totalorder %s564_s5, %s564_s5 }
  0x1c   : > { %v525_v23 = vpack.c.bf16 %v268_v22, %v267_v21  ;;  %v270_v25 = vld [vmem:[%s669_s26 + $0x78] sm:$0xff]  ;;  %v254_v27 = vld [vmem:[%s664_s22] sm:$0xff] }
  0x1d   : > { %v528_v26 = vpack.c.bf16 %v270_v25, %v269_v24  ;;  %v253_v28 = vld [vmem:[#allocation2] sm:$0xff]  ;;  %p566_p9 = pnand %p565_p8, %p693_p7  ;;  %p573_p13 = por %p572_p12, %p571_p11 }
  0x1e   : > { %511 = vmatpush3.bf16.msra.mxu0 %v510_v8 }
  0x1f   : > { %512 = vmatprep.subr.bf16.mxu0 %v618_v4  ;;  %p567_p10 = pneg %p566_p9 }
  0x21   : > { %p574_p0 = pnand %p573_p13, %p567_p10 }
  0x22   : > { %514 = vmatpush3.bf16.msra.mxu0 %v513_v11 }
  0x23   : > { %515 = vmatprep.subr.bf16.mxu0 %v618_v4 }
  0x26   : > { %517 = vmatpush3.bf16.msra.mxu0 %v516_v14 }
  0x27   : > { %518 = vmatprep.subr.bf16.mxu0 %v618_v4 }
  0x2a   : > { %520 = vmatpush3.bf16.msra.mxu0 %v519_v17 }
  0x2b   : > { %521 = vmatprep.subr.bf16.mxu0 %v618_v4 }
  0x2e   : > { %523 = vmatpush3.bf16.msra.mxu0 %v522_v20 }
  0x2f   : > { %524 = vmatprep.subr.bf16.mxu0 %v618_v4 }
  0x32   : > { %526 = vmatpush3.bf16.msra.mxu0 %v525_v23 }
  0x33   : > { %527 = vmatprep.subr.bf16.mxu0 %v618_v4 }
  0x36   : > { %529 = vmatpush3.bf16.msra.mxu0 %v528_v26 }
  0x39   : > { %504 = vmatmul.mubr.f32.vlgmr.msra.gmra.mrb[0].mxu0 %v254_v27 }
 0x10c   : > { %v337_v29 = vpop.f32.mrb[0].mxu0 }
 0x10d   : > { %v341_v30 = vadd.f32 %v337_v29, %v253_v28  ;;  %v505_v31 = vpop.f32.mrb[1].mxu0 }
 0x10f   : > { %342 = vst [vmem:[#allocation2] sm:$0xff] %v341_v30 }
 0x110   : > { %577 = shalt.err (!%p574_p0)
}
 0x111   : > { %s578_s8 = scalar_lea.hbm %s731_s3, 128 }
 0x112   : > { %p579_p1 = scmp.ne.s32.totalorder %s731_s3, %s578_s8  ;;  %p584_p4 = scmp.lt.u32.totalorder %s578_s8, %s731_s3 }
 0x114   : > { %p580_p2 = pnand %p579_p1, %p693_p7 }
 0x116   : > { %p581_p3 = pneg %p580_p2 }
 0x118   : > { %p586_p5 = pnand %p584_p4, %p581_p3 }
 0x11a   : > { %589 = shalt.err (!%p586_p5)
}
 0x11b   : > { %531 = dma.vmem_to_hbm [thread:$0]  (%p693_p7), %s354_s30, 128, %s731_s3, [#allocation3]  }
 0x11c   : > { %603 = dma.done.wait (%p693_p7), [#allocation3], 128  }
 0x11d   : > { %605 = vsyncadd (%p693_p7), [#allocation3], 4294967168 }
 0x11e PF: > { %s14_s14 = sadd.s32 1, %s616_s14   ;;  %s733_s12 = smov %s612_s13 }
 0x11f   : > { %p11_p6 = scmp.ge.s32.totalorder %s14_s14, 4   ;;  %s734_s13 = smov %s736_s16 }
 0x121   :  { %13 = sbr.rel (!%p11_p6) target bundleno = 2 (0x2), region = 70 }
 0x128   :  { %366 = vsyncpa [#allocation3], 1 }
 0x129   :  { %368 = vsyncpa [#allocation3 + $0x1], 1 }

</bundles_post_ra>
